<compile_context>
chip_gen: v7x
topology: tpu7x:2x2x1
jax: 0.10.0
libtpu: 0.0.40
codegen_flags: <defaults>
</compile_context>

<pallas_src>
import functools
import jax
import jax.numpy as jnp
from jax.experimental import pallas as pl
from jax.experimental.pallas import tpu as pltpu

NEG_SLOPE = 0.2      # GATConv default LeakyReLU negative_slope
MASK_VAL = -1e30     # finite "minus infinity" for masked (non-edge) attention logits

_VMEM_LIMIT = 32 * 1024 * 1024   # safe ceiling on v5e/v6e/v7x


# ---------------------------------------------------------------------------
# Tiling helpers
# ---------------------------------------------------------------------------

def _auto_tiles(n_pad):
    """Pick (tile_dst, tile_src).

    Large src tiles amortize per-grid-step overhead on the reduction axis; dst tiles are
    kept small enough that at least 2 exist whenever possible so the 'parallel' dst axis
    can shard across v7x's two TensorCores.
    """
    tile_src = 128
    for t in (512, 256):
        if n_pad % t == 0:
            tile_src = t
            break
    tile_dst = 128
    if n_pad % 256 == 0 and n_pad // 256 >= 2:
        tile_dst = 256
    return tile_dst, tile_src


def _pad_rows(a, n_pad):
    return jnp.pad(a, ((0, n_pad - a.shape[0]), (0, 0)))


def _prep_adj(adj, n_pad):
    n = adj.shape[0]
    return jnp.pad(adj.astype(jnp.int8), ((0, n_pad - n), (0, n_pad - n)))


# ---------------------------------------------------------------------------
# Per-layer projection kernel (runs once per row tile, hoisted out of the grid)
# ---------------------------------------------------------------------------

def _project_kernel(x_ref, w_ref, wa_ref, xp_ref, a_ref):
    x = x_ref[...]                                                       # [t, F]
    xp_ref[...] = jnp.dot(x, w_ref[...],
                          preferred_element_type=jnp.float32).astype(xp_ref.dtype)
    a_ref[...] = jnp.dot(x, wa_ref[...], preferred_element_type=jnp.float32)


def _project(x_p, w_all, wa_cat, *, tile):
    """xp = x @ W_all (bf16, MXU operand), a = x @ [Wa_src | Wa_dst] (f32)."""
    n_pad, feat = x_p.shape
    p_dim = w_all.shape[1]
    a_dim = wa_cat.shape[1]
    return pl.pallas_call(
        _project_kernel,
        out_shape=(jax.ShapeDtypeStruct((n_pad, p_dim), jnp.bfloat16),
                   jax.ShapeDtypeStruct((n_pad, a_dim), jnp.float32)),
        grid_spec=pltpu.PrefetchScalarGridSpec(
            num_scalar_prefetch=0,
            grid=(n_pad // tile,),
            in_specs=[
                pl.BlockSpec((tile, feat), lambda i: (i, 0)),
                pl.BlockSpec((feat, p_dim), lambda i: (0, 0)),
                pl.BlockSpec((feat, a_dim), lambda i: (0, 0)),
            ],
            out_specs=(pl.BlockSpec((tile, p_dim), lambda i: (i, 0)),
                       pl.BlockSpec((tile, a_dim), lambda i: (i, 0)))),
        compiler_params=pltpu.CompilerParams(
            dimension_semantics=("parallel",),
            vmem_limit_bytes=_VMEM_LIMIT),
    )(x_p, w_all, wa_cat)


# ---------------------------------------------------------------------------
# Attention-grid kernels (flash-style online softmax over src tiles)
# ---------------------------------------------------------------------------

def _attn_update(adst_ref, asrcT_ref, xp_ref, adj_ref, m_ref, l_ref, acc_ref,
                 *, heads, dim):
    """Online-softmax update for one (dst_tile, src_tile) block; lane-dense state stores."""
    @pl.when(pl.program_id(1) == 0)
    def _():
        m_ref[...] = jnp.full_like(m_ref, MASK_VAL)
        l_ref[...] = jnp.zeros_like(l_ref)
        acc_ref[...] = jnp.zeros_like(acc_ref)

    # Integer compare (no float convert of the [td,ts] block); widen to int32 so the mask
    # layout matches the f32 selects below.
    edge = adj_ref[...].astype(jnp.int32) != 0                            # [td, ts]
    a_d = adst_ref[...]                                                   # [td, H]
    a_s = asrcT_ref[...]                                                  # [H, ts]
    xp = xp_ref[...]                                                      # [ts, H*dim] bf16

    m_prev = m_ref[...]                                                   # single full reads
    l_prev = l_ref[...]
    acc_prev = acc_ref[...]

    m_cols, l_cols, acc_cols = [], [], []
    for h in range(heads):
        e = a_d[:, h:h + 1] + a_s[h:h + 1, :]                             # [td, ts]
        e = jnp.where(e > 0, e, NEG_SLOPE * e)                            # LeakyReLU
        e = jnp.where(edge, e, MASK_VAL)                                  # mask non-edges
        m_p = m_prev[:, h:h + 1]                                          # [td, 1]
        m_n = jnp.maximum(m_p, jnp.max(e, axis=-1, keepdims=True))
        # Zero non-edge probabilities explicitly: fully-masked blocks add no mass.
        p = jnp.where(edge, jnp.exp(e - m_n), 0.0)                        # [td, ts]
        corr = jnp.exp(m_p - m_n)                                         # [td, 1]
        sl = slice(h * dim, (h + 1) * dim)
        l_cols.append(corr * l_prev[:, h:h + 1] + jnp.sum(p, axis=-1, keepdims=True))
        acc_cols.append(corr * acc_prev[:, sl] +
                        jnp.dot(p.astype(xp.dtype), xp[:, sl],
                                preferred_element_type=jnp.float32))
        m_cols.append(m_n)

    # Single full-width store per state ref (lane-dense).
    m_ref[...] = m_cols[0] if heads == 1 else jnp.concatenate(m_cols, axis=1)
    l_ref[...] = l_cols[0] if heads == 1 else jnp.concatenate(l_cols, axis=1)
    acc_ref[...] = acc_cols[0] if heads == 1 else jnp.concatenate(acc_cols, axis=1)


def _gat_conv1_kernel(adst_ref, asrcT_ref, xp_ref, adj_ref, b_ref, out_ref,
                      m_ref, l_ref, acc_ref, *, heads, dim):
    """GATConv(concat=True) + bias + ELU.  out_ref: lane-dense [tile_dst, H*D]."""
    _attn_update(adst_ref, asrcT_ref, xp_ref, adj_ref, m_ref, l_ref, acc_ref,
                 heads=heads, dim=dim)

    @pl.when(pl.program_id(1) == pl.num_programs(1) - 1)
    def _():
        l_all = l_ref[...]
        acc = acc_ref[...]
        cols = []
        for h in range(heads):
            inv = pl.reciprocal(l_all[:, h:h + 1], approx=True)           # EUP slot
            cols.append(acc[:, h * dim:(h + 1) * dim] * inv)
        y = (cols[0] if heads == 1 else jnp.concatenate(cols, axis=1)) + b_ref[...]
        # ELU (alpha=1); clamp exp argument so the dead branch never produces inf.
        out_ref[...] = jnp.where(y > 0.0, y, jnp.exp(jnp.minimum(y, 0.0)) - 1.0)


def _gat_conv2_kernel(adst_ref, asrcT_ref, xp_ref, adj_ref, b_ref,
                      logits_ref, logp_ref, m_ref, l_ref, acc_ref,
                      *, heads, cpad, nclass):
    """GATConv(concat=False, mean over heads) + bias, then log_softmax(dim=1)."""
    _attn_update(adst_ref, asrcT_ref, xp_ref, adj_ref, m_ref, l_ref, acc_ref,
                 heads=heads, dim=cpad)

    @pl.when(pl.program_id(1) == pl.num_programs(1) - 1)
    def _():
        l_all = l_ref[...]
        acc = acc_ref[...]
        s = jnp.zeros(logits_ref.shape, jnp.float32)
        for h in range(heads):
            inv = pl.reciprocal(l_all[:, h:h + 1], approx=True)
            s = s + acc[:, h * cpad:(h + 1) * cpad] * inv
        logits = s * (1.0 / heads) + b_ref[...]
        logits_ref[...] = logits
        # log_softmax over the real classes only (padded lanes masked out).
        col = jax.lax.broadcasted_iota(jnp.int32, logits.shape, 1)
        lm = jnp.where(col < nclass, logits, MASK_VAL)
        mx = jnp.max(lm, axis=-1, keepdims=True)
        lse = jnp.log(jnp.sum(jnp.exp(lm - mx), axis=-1, keepdims=True)) + mx
        logp_ref[...] = logits - lse


# ---------------------------------------------------------------------------
# Layer wrappers
# ---------------------------------------------------------------------------

def gat_conv1(x, W, att_src, att_dst, bias, adj, *, tile_dst=None, tile_src=None):
    """First GATConv layer: concat heads + ELU. Returns [N, H*D] float32."""
    H, F, D = W.shape
    N = x.shape[0]
    HD = H * D
    n_pad = pl.cdiv(N, 128) * 128
    td, ts = _auto_tiles(n_pad)
    td = td if tile_dst is None else tile_dst
    ts = ts if tile_src is None else tile_src

    x_p = _pad_rows(x.astype(jnp.float32), n_pad)
    adj_p = _prep_adj(adj, n_pad)

    # Fold attention vectors into the weights: a_src = x @ Wa_src, a_dst = x @ Wa_dst.
    w_all = jnp.transpose(W.astype(jnp.float32), (1, 0, 2)).reshape(F, HD)
    wa_src = jnp.einsum('hfd,hd->fh', W, att_src.reshape(H, D))
    wa_dst = jnp.einsum('hfd,hd->fh', W, att_dst.reshape(H, D))
    wa_cat = jnp.concatenate([wa_src, wa_dst], axis=1).astype(jnp.float32)  # [F, 2H]

    # Per-layer projections computed ONCE (hoisted out of the attention grid).
    xp, a = _project(x_p, w_all, wa_cat, tile=ts)
    a_srcT = a[:, :H].T                                                   # [H, n_pad]
    a_dst = a[:, H:]                                                      # [n_pad, H]
    b2d = bias.reshape(1, HD).astype(jnp.float32)

    grid = (n_pad // td, n_pad // ts)
    out = pl.pallas_call(
        functools.partial(_gat_conv1_kernel, heads=H, dim=D),
        out_shape=jax.ShapeDtypeStruct((n_pad, HD), jnp.float32),
        grid_spec=pltpu.PrefetchScalarGridSpec(
            num_scalar_prefetch=0,
            grid=grid,
            in_specs=[
                pl.BlockSpec((td, H), lambda i, j: (i, 0)),      # a_dst
                pl.BlockSpec((H, ts), lambda i, j: (0, j)),      # a_src^T
                pl.BlockSpec((ts, HD), lambda i, j: (j, 0)),     # xp (bf16)
                pl.BlockSpec((td, ts), lambda i, j: (i, j)),     # adjacency (int8)
                pl.BlockSpec((1, HD), lambda i, j: (0, 0)),      # bias
            ],
            out_specs=pl.BlockSpec((td, HD), lambda i, j: (i, 0)),
            scratch_shapes=[
                pltpu.VMEM((td, H), jnp.float32),                # running max
                pltpu.VMEM((td, H), jnp.float32),                # running sum
                pltpu.VMEM((td, HD), jnp.float32),               # running weighted acc
            ]),
        compiler_params=pltpu.CompilerParams(
            dimension_semantics=("parallel", "arbitrary"),
            vmem_limit_bytes=_VMEM_LIMIT),
    )(a_dst, a_srcT, xp, adj_p, b2d)
    return out[:N]


def gat_conv2(x, W, att_src, att_dst, bias, adj, *, tile_dst=None, tile_src=None):
    """Second GATConv layer: mean over heads + log_softmax. Returns (logits, log_probs)."""
    H, F, C = W.shape
    N = x.shape[0]
    cpad = pl.cdiv(C, 128) * 128
    n_pad = pl.cdiv(N, 128) * 128
    td, ts = _auto_tiles(n_pad)
    td = td if tile_dst is None else tile_dst
    ts = ts if tile_src is None else tile_src

    x_p = _pad_rows(x.astype(jnp.float32), n_pad)
    adj_p = _prep_adj(adj, n_pad)

    Wp = jnp.pad(W.astype(jnp.float32), ((0, 0), (0, 0), (0, cpad - C)))
    w_all = jnp.transpose(Wp, (1, 0, 2)).reshape(F, H * cpad)
    wa_src = jnp.einsum('hfc,hc->fh', W, att_src.reshape(H, C))
    wa_dst = jnp.einsum('hfc,hc->fh', W, att_dst.reshape(H, C))
    wa_cat = jnp.concatenate([wa_src, wa_dst], axis=1).astype(jnp.float32)  # [F, 2H]

    xp, a = _project(x_p, w_all, wa_cat, tile=ts)
    a_srcT = a[:, :H].T                                                   # [H, n_pad]
    a_dst = a[:, H:]                                                      # [n_pad, H]
    b2d = jnp.pad(bias.reshape(1, C).astype(jnp.float32), ((0, 0), (0, cpad - C)))

    grid = (n_pad // td, n_pad // ts)
    logits, logp = pl.pallas_call(
        functools.partial(_gat_conv2_kernel, heads=H, cpad=cpad, nclass=C),
        out_shape=(jax.ShapeDtypeStruct((n_pad, cpad), jnp.float32),
                   jax.ShapeDtypeStruct((n_pad, cpad), jnp.float32)),
        grid_spec=pltpu.PrefetchScalarGridSpec(
            num_scalar_prefetch=0,
            grid=grid,
            in_specs=[
                pl.BlockSpec((td, H), lambda i, j: (i, 0)),
                pl.BlockSpec((H, ts), lambda i, j: (0, j)),
                pl.BlockSpec((ts, H * cpad), lambda i, j: (j, 0)),
                pl.BlockSpec((td, ts), lambda i, j: (i, j)),
                pl.BlockSpec((1, cpad), lambda i, j: (0, 0)),
            ],
            out_specs=(pl.BlockSpec((td, cpad), lambda i, j: (i, 0)),
                       pl.BlockSpec((td, cpad), lambda i, j: (i, 0))),
            scratch_shapes=[
                pltpu.VMEM((td, H), jnp.float32),
                pltpu.VMEM((td, H), jnp.float32),
                pltpu.VMEM((td, H * cpad), jnp.float32),
            ]),
        compiler_params=pltpu.CompilerParams(
            dimension_semantics=("parallel", "arbitrary"),
            vmem_limit_bytes=_VMEM_LIMIT),
    )(a_dst, a_srcT, xp, adj_p, b2d)
    return logits[:N, :C], logp[:N, :C]


def gat_forward(x, adj, params, *, tile_dst=None, tile_src=None):
    """Full GAT forward pass (eval mode). Returns (feature_vals, log_probs)."""
    W1, a_s1, a_d1, b1, W2, a_s2, a_d2, b2 = params
    h1 = gat_conv1(x, W1, a_s1, a_d1, b1, adj, tile_dst=tile_dst, tile_src=tile_src)
    logits, logp = gat_conv2(h1, W2, a_s2, a_d2, b2, adj,
                             tile_dst=tile_dst, tile_src=tile_src)
    feature_vals = {"conv1": h1, "conv2": logits}
    return feature_vals, logp


def glorot(key, shape):
    fan_in, fan_out = shape[-2], shape[-1]
    limit = (6.0 / (fan_in + fan_out)) ** 0.5
    return jax.random.uniform(key, shape, jnp.float32, -limit, limit)


if __name__ == "__main__":
    # Small synthetic graph consistent with GAT(nfeat, nhid=8, heads=8, nclass, output_heads=1).
    # N=200 is deliberately not a multiple of 128 to exercise padding + a multi-tile grid.
    N, NFEAT, NHID, NCLASS, HEADS, OUT_HEADS, NEDGES = 200, 32, 8, 4, 8, 1, 800

    keys = iter(jax.random.split(jax.random.PRNGKey(0), 12))

    x = jax.random.normal(next(keys), (N, NFEAT), jnp.float32)          # data.x
    src = jax.random.randint(next(keys), (NEDGES,), 0, N)               # edge_index[0]
    dst = jax.random.randint(next(keys), (NEDGES,), 0, N)               # edge_index[1]
    # Dense adjacency mask: adj[i, j] = 1 iff edge j -> i ; plus self-loops
    # (GATConv add_self_loops=True).
    adj = jnp.zeros((N, N), jnp.float32).at[dst, src].set(1.0)
    adj = jnp.maximum(adj, jnp.eye(N, dtype=jnp.float32)).astype(jnp.int8)

    # Deterministic parameter init (glorot weights/att, zero bias; PyG defaults).
    W1 = glorot(next(keys), (HEADS, NFEAT, NHID))
    a_src1 = glorot(next(keys), (HEADS, 1, NHID))
    a_dst1 = glorot(next(keys), (HEADS, 1, NHID))
    b1 = jnp.zeros((HEADS * NHID,), jnp.float32)

    W2 = glorot(next(keys), (OUT_HEADS, NHID * HEADS, NCLASS))
    a_src2 = glorot(next(keys), (OUT_HEADS, 1, NCLASS))
    a_dst2 = glorot(next(keys), (OUT_HEADS, 1, NCLASS))
    b2 = jnp.zeros((NCLASS,), jnp.float32)

    params = (W1, a_src1, a_dst1, b1, W2, a_src2, a_dst2, b2)

    feature_vals, log_probs = gat_forward(x, adj, params)
    jax.block_until_ready((feature_vals["conv1"], feature_vals["conv2"], log_probs))

    assert feature_vals["conv1"].shape == (N, NHID * HEADS)
    assert feature_vals["conv2"].shape == (N, NCLASS)
    assert log_probs.shape == (N, NCLASS)
    assert bool(jnp.all(jnp.isfinite(log_probs)))
    # log_softmax rows must exponentiate-sum to 1.
    assert bool(jnp.allclose(jnp.sum(jnp.exp(log_probs), axis=1), 1.0, atol=1e-3))
    print("KERNEL_OK")
</pallas_src>

<mosaic_0001>
module attributes {stable_mosaic.version = 11 : i64} {
  func.func @_project_kernel(%arg0: i32, %arg1: memref<256x32xf32, #tpu.memory_space<vmem>>, %arg2: memref<32x64xf32, #tpu.memory_space<vmem>>, %arg3: memref<32x16xf32, #tpu.memory_space<vmem>>, %arg4: memref<256x64xbf16, #tpu.memory_space<vmem>>, %arg5: memref<256x16xf32, #tpu.memory_space<vmem>>) attributes {dimension_semantics = [#tpu.dimension_semantics<parallel>], iteration_bounds = array<i64: 1>, scalar_prefetch = 0 : i64, scratch_operands = 0 : i64, tpu.core_type = #tpu.core_type<tc>, window_params = [{transform_indices = @transform_0, window_bounds = array<i64: 256, 32>}, {pipeline_mode = #tpu.pipeline_mode<synchronous>, transform_indices = @transform_1, window_bounds = array<i64: 32, 64>}, {pipeline_mode = #tpu.pipeline_mode<synchronous>, transform_indices = @transform_2, window_bounds = array<i64: 32, 16>}, {transform_indices = @transform_3, window_bounds = array<i64: 256, 64>}, {transform_indices = @transform_4, window_bounds = array<i64: 256, 16>}]} {
    %c0 = arith.constant 0 : index
    %c0_0 = arith.constant 0 : index
    %0 = vector.load %arg1[%c0, %c0_0] : memref<256x32xf32, #tpu.memory_space<vmem>>, vector<256x32xf32>
    %c0_1 = arith.constant 0 : index
    %c0_2 = arith.constant 0 : index
    %1 = vector.load %arg2[%c0_1, %c0_2] : memref<32x64xf32, #tpu.memory_space<vmem>>, vector<32x64xf32>
    %cst = arith.constant dense<0.000000e+00> : vector<256x64xf32>
    %2 = tpu.matmul %0, %1, %cst {dimension_numbers = #tpu.dot_dimension_numbers<[1], [0], [0], [1], [0, 0, 1, 1], [], []>} : vector<256x32xf32>, vector<32x64xf32>, vector<256x64xf32> -> vector<256x64xf32>
    %3 = arith.truncf %2 : vector<256x64xf32> to vector<256x64xbf16>
    %c0_3 = arith.constant 0 : index
    %c0_4 = arith.constant 0 : index
    %4 = vector.load %arg4[%c0_3, %c0_4] : memref<256x64xbf16, #tpu.memory_space<vmem>>, vector<256x64xbf16>
    tpu.vector_store %arg4[%c0_3, %c0_4], %3 {strides = array<i32>} : memref<256x64xbf16, #tpu.memory_space<vmem>>, vector<256x64xbf16>,
    %c0_5 = arith.constant 0 : index
    %c0_6 = arith.constant 0 : index
    %5 = vector.load %arg3[%c0_5, %c0_6] : memref<32x16xf32, #tpu.memory_space<vmem>>, vector<32x16xf32>
    %cst_7 = arith.constant dense<0.000000e+00> : vector<256x16xf32>
    %6 = tpu.matmul %0, %5, %cst_7 {dimension_numbers = #tpu.dot_dimension_numbers<[1], [0], [0], [1], [0, 0, 1, 1], [], []>} : vector<256x32xf32>, vector<32x16xf32>, vector<256x16xf32> -> vector<256x16xf32>
    %c0_8 = arith.constant 0 : index
    %c0_9 = arith.constant 0 : index
    %7 = vector.load %arg5[%c0_8, %c0_9] : memref<256x16xf32, #tpu.memory_space<vmem>>, vector<256x16xf32>
    tpu.vector_store %arg5[%c0_8, %c0_9], %6 {strides = array<i32>} : memref<256x16xf32, #tpu.memory_space<vmem>>, vector<256x16xf32>,
    return
  }
  func.func @transform_0(%arg0: i32) -> (i32, i32) {
    %c0_i32 = arith.constant 0 : i32
    %c0_i32_0 = arith.constant 0 : i32
    return %arg0, %c0_i32 : i32, i32
  }
  func.func @transform_1(%arg0: i32) -> (i32, i32) {
    %c0_i32 = arith.constant 0 : i32
    %c0_i32_0 = arith.constant 0 : i32
    %c0_i32_1 = arith.constant 0 : i32
    return %c0_i32, %c0_i32_0 : i32, i32
  }
  func.func @transform_2(%arg0: i32) -> (i32, i32) {
    %c0_i32 = arith.constant 0 : i32
    %c0_i32_0 = arith.constant 0 : i32
    %c0_i32_1 = arith.constant 0 : i32
    return %c0_i32, %c0_i32_0 : i32, i32
  }
  func.func @transform_3(%arg0: i32) -> (i32, i32) {
    %c0_i32 = arith.constant 0 : i32
    %c0_i32_0 = arith.constant 0 : i32
    return %arg0, %c0_i32 : i32, i32
  }
  func.func @transform_4(%arg0: i32) -> (i32, i32) {
    %c0_i32 = arith.constant 0 : i32
    %c0_i32_0 = arith.constant 0 : i32
    return %arg0, %c0_i32 : i32, i32
  }
}

</mosaic_0001>

<bundles_post_ra>
// kernel: tpu_custom_call.1
= control target key start
LH: loop header
LB: loop body
LE: loop exit
PB: predicated region body
PF: predicated region fallthrough
CT: control target
= control target key end

     0   :  { %vm52_vm0 = vcmask 261120   ;;  %vm764_vm1 = vcmask 130048   ;;  %vm502_vm2 = vcmask 519168   ;;  %s1598_s1 = inlined_call_operand.vmem [shape: f32[32,64], index: 1, kind: input, shape index: {}]   ;;  %s1599_s2 = inlined_call_operand.vmem [shape: f32[32,16], index: 2, kind: input, shape index: {}]   ;;  %s1600_s0 = inlined_call_operand.vmem [shape: f32[256,32], index: 0, kind: input, shape index: {}]   ;;  %s1601_s4 = inlined_call_operand.vmem [shape: f32[256,16], index: 4, kind: output, shape index: {1}]   ;;  %s1602_s3 = inlined_call_operand.vmem [shape: bf16[256,64], index: 3, kind: output, shape index: {0}]  }
   0x1   :  { %v48_v0 = vld [vmem:[%s1598_s1] sm:$0xff]  ;;  %v49_v1 = vld [vmem:[%s1598_s1 + $0x8] sm:$0xff]  ;;  %v50_v5 = vld [vmem:[%s1598_s1 + $0x10] sm:$0xff] }
   0x2   :  { %v535_v2 = vld [vmem:[%s1599_s2] sm:$0xff]  ;;  %v1117_v3 = vpack.c.bf16 %v49_v1, %v48_v0  ;;  %v536_v4 = vld [vmem:[%s1599_s2 + $0x8] sm:$0xff]  ;;  %v51_v6 = vld [vmem:[%s1598_s1 + $0x18] sm:$0xff] }
   0x3   :  { %v1125_v7 = vpack.c.bf16 %v536_v4, %v535_v2  ;;  %v1121_v8 = vpack.c.bf16 %v51_v6, %v50_v5  ;;  %v537_v9 = vld [vmem:[%s1599_s2 + $0x10] sm:$0xff]  ;;  %v538_v10 = vld [vmem:[%s1599_s2 + $0x18] sm:$0xff]  ;;  %v16_v11 = vld [vmem:[%s1600_s0] sm:$0xff] }
   0x4   :  { %1118 = vmatprep.subr.bf16.mxu0 %v1117_v3  ;;  %v1129_v12 = vpack.c.bf16 %v538_v10, %v537_v9  ;;  %1013 = vmatprep.mubr.msk.f32.mxu0 %vm52_vm0, %v16_v11  ;;  %v17_v13 = vld [vmem:[%s1600_s0 + $0x8] sm:$0xff]  ;;  %v18_v14 = vld [vmem:[%s1600_s0 + $0x10] sm:$0xff]  ;;  %v19_v15 = vld [vmem:[%s1600_s0 + $0x18] sm:$0xff] }
   0x5   :  { %1120 = vmatpush3.bf16.msra.mxu0 %v1117_v3  ;;  %1126 = vmatprep.subr.bf16.mxu1 %v1125_v7  ;;  %v20_v16 = vld [vmem:[%s1600_s0 + $0x20] sm:$0xff]  ;;  %v21_v17 = vld [vmem:[%s1600_s0 + $0x28] sm:$0xff]  ;;  %v22_v18 = vld [vmem:[%s1600_s0 + $0x30] sm:$0xff] }
   0x6   :  { %1128 = vmatpush3.bf16.msra.mxu1 %v1125_v7  ;;  %1122 = vmatprep.subr.bf16.mxu0 %v1121_v8  ;;  %v23_v19 = vld [vmem:[%s1600_s0 + $0x38] sm:$0xff]  ;;  %v24_v20 = vld [vmem:[%s1600_s0 + $0x40] sm:$0xff]  ;;  %v25_v21 = vld [vmem:[%s1600_s0 + $0x48] sm:$0xff] }
   0x7   :  { %1130 = vmatprep.subr.bf16.mxu1 %v1129_v12  ;;  %1069 = vmatprep.mubr.msk.f32.mxu1 %vm52_vm0, %v16_v11  ;;  %v26_v22 = vld [vmem:[%s1600_s0 + $0x50] sm:$0xff]  ;;  %v27_v23 = vld [vmem:[%s1600_s0 + $0x58] sm:$0xff]  ;;  %v28_v24 = vld [vmem:[%s1600_s0 + $0x60] sm:$0xff] }
   0x8   :  { %v29_v25 = vld [vmem:[%s1600_s0 + $0x68] sm:$0xff]  ;;  %v30_v26 = vld [vmem:[%s1600_s0 + $0x70] sm:$0xff]  ;;  %v31_v27 = vld [vmem:[%s1600_s0 + $0x78] sm:$0xff] }
   0x9   :  { %1124 = vmatpush3.bf16.msra.mxu0 %v1121_v8  ;;  %v32_v28 = vld [vmem:[%s1600_s0 + $0x80] sm:$0xff]  ;;  %v33_v29 = vld [vmem:[%s1600_s0 + $0x88] sm:$0xff]  ;;  %v34_v30 = vld [vmem:[%s1600_s0 + $0x90] sm:$0xff] }
   0xa   :  { %1132 = vmatpush3.bf16.msra.mxu1 %v1129_v12  ;;  %v35_v31 = vld [vmem:[%s1600_s0 + $0x98] sm:$0xff]  ;;  %v36_v32 = vld [vmem:[%s1600_s0 + $0xa0] sm:$0xff]  ;;  %v37_v33 = vld [vmem:[%s1600_s0 + $0xa8] sm:$0xff] }
   0xb   :  { %v38_v34 = vld [vmem:[%s1600_s0 + $0xb0] sm:$0xff]  ;;  %v39_v35 = vld [vmem:[%s1600_s0 + $0xb8] sm:$0xff]  ;;  %v40_v36 = vld [vmem:[%s1600_s0 + $0xc0] sm:$0xff] }
   0xc   :  { %1014 = vmatmul.mubr.msk.f32.vlgmr.msra.gmra.mrb[0].mxu0 %vm52_vm0, %v17_v13  ;;  %v41_v37 = vld [vmem:[%s1600_s0 + $0xc8] sm:$0xff]  ;;  %v42_v38 = vld [vmem:[%s1600_s0 + $0xd0] sm:$0xff]  ;;  %v43_v39 = vld [vmem:[%s1600_s0 + $0xd8] sm:$0xff] }
   0xd   :  { %1070 = vmatmul.mubr.msk.f32.vlgmr.msra.gmra.mrb[0].mxu1 %vm52_vm0, %v17_v13  ;;  %1016 = vmatprep.mubr.msk.f32.mxu0 %vm52_vm0, %v18_v14  ;;  %v44_v40 = vld [vmem:[%s1600_s0 + $0xe0] sm:$0xff]  ;;  %v45_v41 = vld [vmem:[%s1600_s0 + $0xe8] sm:$0xff]  ;;  %v46_v42 = vld [vmem:[%s1600_s0 + $0xf0] sm:$0xff] }
   0xe   :  { %1072 = vmatprep.mubr.msk.f32.mxu1 %vm52_vm0, %v18_v14  ;;  %v47_v43 = vld [vmem:[%s1600_s0 + $0xf8] sm:$0xff] }
  0x10   :  { %1017 = vmatmul.mubr.msk.f32.gmra.mrb[2].mxu0 %vm52_vm0, %v19_v15 }
  0x11   :  { %1073 = vmatmul.mubr.msk.f32.gmra.mrb[2].mxu1 %vm52_vm0, %v19_v15  ;;  %1019 = vmatprep.mubr.msk.f32.mxu0 %vm52_vm0, %v20_v16 }
  0x12   :  { %1075 = vmatprep.mubr.msk.f32.mxu1 %vm52_vm0, %v20_v16 }
  0x14   :  { %1020 = vmatmul.mubr.msk.f32.gmra.mrb[4].mxu0 %vm52_vm0, %v21_v17 }
  0x15   :  { %1076 = vmatmul.mubr.msk.f32.gmra.mrb[4].mxu1 %vm52_vm0, %v21_v17  ;;  %1022 = vmatprep.mubr.msk.f32.mxu0 %vm52_vm0, %v22_v18 }
  0x16   :  { %1078 = vmatprep.mubr.msk.f32.mxu1 %vm52_vm0, %v22_v18 }
  0x18   :  { %1023 = vmatmul.mubr.msk.f32.gmra.mrb[6].mxu0 %vm52_vm0, %v23_v19 }
  0x19   :  { %1079 = vmatmul.mubr.msk.f32.gmra.mrb[6].mxu1 %vm52_vm0, %v23_v19  ;;  %1025 = vmatprep.mubr.msk.f32.mxu0 %vm52_vm0, %v24_v20 }
  0x1a   :  { %1081 = vmatprep.mubr.msk.f32.mxu1 %vm52_vm0, %v24_v20 }
  0x1c   :  { %1026 = vmatmul.mubr.msk.f32.gmra.mrb[8].mxu0 %vm52_vm0, %v25_v21 }
  0x1d   :  { %1082 = vmatmul.mubr.msk.f32.gmra.mrb[8].mxu1 %vm52_vm0, %v25_v21  ;;  %1028 = vmatprep.mubr.msk.f32.mxu0 %vm52_vm0, %v26_v22 }
  0x1e   :  { %1084 = vmatprep.mubr.msk.f32.mxu1 %vm52_vm0, %v26_v22 }
  0x20   :  { %1029 = vmatmul.mubr.msk.f32.gmra.mrb[10].mxu0 %vm52_vm0, %v27_v23 }
  0x21   :  { %1085 = vmatmul.mubr.msk.f32.gmra.mrb[10].mxu1 %vm52_vm0, %v27_v23  ;;  %1031 = vmatprep.mubr.msk.f32.mxu0 %vm52_vm0, %v28_v24 }
  0x22   :  { %1087 = vmatprep.mubr.msk.f32.mxu1 %vm52_vm0, %v28_v24 }
  0x24   :  { %1032 = vmatmul.mubr.msk.f32.gmra.mrb[12].mxu0 %vm52_vm0, %v29_v25 }
  0x25   :  { %1088 = vmatmul.mubr.msk.f32.gmra.mrb[12].mxu1 %vm52_vm0, %v29_v25  ;;  %1034 = vmatprep.mubr.msk.f32.mxu0 %vm52_vm0, %v30_v26 }
  0x26   :  { %1090 = vmatprep.mubr.msk.f32.mxu1 %vm52_vm0, %v30_v26 }
  0x28   :  { %1035 = vmatmul.mubr.msk.f32.gmra.mrb[14].mxu0 %vm52_vm0, %v31_v27 }
  0x29   :  { %1091 = vmatmul.mubr.msk.f32.gmra.mrb[14].mxu1 %vm52_vm0, %v31_v27  ;;  %1037 = vmatprep.mubr.msk.f32.mxu0 %vm52_vm0, %v32_v28 }
  0x2a   :  { %1093 = vmatprep.mubr.msk.f32.mxu1 %vm52_vm0, %v32_v28 }
  0x2c   :  { %1038 = vmatmul.mubr.msk.f32.gmra.mrb[16].mxu0 %vm52_vm0, %v33_v29 }
  0x2d   :  { %1094 = vmatmul.mubr.msk.f32.gmra.mrb[16].mxu1 %vm52_vm0, %v33_v29  ;;  %1040 = vmatprep.mubr.msk.f32.mxu0 %vm52_vm0, %v34_v30 }
  0x2e   :  { %1096 = vmatprep.mubr.msk.f32.mxu1 %vm52_vm0, %v34_v30 }
  0x30   :  { %1041 = vmatmul.mubr.msk.f32.gmra.mrb[18].mxu0 %vm52_vm0, %v35_v31 }
  0x31   :  { %1097 = vmatmul.mubr.msk.f32.gmra.mrb[18].mxu1 %vm52_vm0, %v35_v31  ;;  %1043 = vmatprep.mubr.msk.f32.mxu0 %vm52_vm0, %v36_v32 }
  0x32   :  { %1099 = vmatprep.mubr.msk.f32.mxu1 %vm52_vm0, %v36_v32 }
  0x34   :  { %1044 = vmatmul.mubr.msk.f32.gmra.mrb[20].mxu0 %vm52_vm0, %v37_v33 }
  0x35   :  { %1100 = vmatmul.mubr.msk.f32.gmra.mrb[20].mxu1 %vm52_vm0, %v37_v33  ;;  %1046 = vmatprep.mubr.msk.f32.mxu0 %vm52_vm0, %v38_v34 }
  0x36   :  { %1102 = vmatprep.mubr.msk.f32.mxu1 %vm52_vm0, %v38_v34 }
  0x38   :  { %1047 = vmatmul.mubr.msk.f32.gmra.mrb[22].mxu0 %vm52_vm0, %v39_v35 }
  0x39   :  { %1103 = vmatmul.mubr.msk.f32.gmra.mrb[22].mxu1 %vm52_vm0, %v39_v35  ;;  %1049 = vmatprep.mubr.msk.f32.mxu0 %vm52_vm0, %v40_v36 }
  0x3a   :  { %1105 = vmatprep.mubr.msk.f32.mxu1 %vm52_vm0, %v40_v36 }
  0x3c   :  { %1050 = vmatmul.mubr.msk.f32.gmra.mrb[24].mxu0 %vm52_vm0, %v41_v37 }
  0x3d   :  { %1106 = vmatmul.mubr.msk.f32.gmra.mrb[24].mxu1 %vm52_vm0, %v41_v37  ;;  %1052 = vmatprep.mubr.msk.f32.mxu0 %vm52_vm0, %v42_v38 }
  0x3e   :  { %1108 = vmatprep.mubr.msk.f32.mxu1 %vm52_vm0, %v42_v38 }
  0x40   :  { %1053 = vmatmul.mubr.msk.f32.gmra.mrb[26].mxu0 %vm52_vm0, %v43_v39 }
  0x41   :  { %1109 = vmatmul.mubr.msk.f32.gmra.mrb[26].mxu1 %vm52_vm0, %v43_v39  ;;  %1055 = vmatprep.mubr.msk.f32.mxu0 %vm52_vm0, %v44_v40 }
  0x42   :  { %1111 = vmatprep.mubr.msk.f32.mxu1 %vm52_vm0, %v44_v40 }
  0x44   :  { %1056 = vmatmul.mubr.msk.f32.gmra.mrb[28].mxu0 %vm52_vm0, %v45_v41 }
  0x45   :  { %1112 = vmatmul.mubr.msk.f32.gmra.mrb[28].mxu1 %vm52_vm0, %v45_v41  ;;  %1058 = vmatprep.mubr.msk.f32.mxu0 %vm52_vm0, %v46_v42 }
  0x46   :  { %1114 = vmatprep.mubr.msk.f32.mxu1 %vm52_vm0, %v46_v42 }
  0x48   :  { %1059 = vmatmul.mubr.msk.f32.gmra.mrb[30].mxu0 %vm52_vm0, %v47_v43 }
  0x49   :  { %1115 = vmatmul.mubr.msk.f32.gmra.mrb[30].mxu1 %vm52_vm0, %v47_v43 }
  0xdf   :  { %v1015_v44 = vpop.f32.mrb[0].mxu0 }
  0xe0   :  { %v902_v45 = vpack.c.bf16 %v1015_v44, %v1015_v44  ;;  %v215_v46 = vpop.f32.mrb[1].mxu0  ;;  %v1071_v47 = vpop.f32.mrb[0].mxu1 }
  0xe1   :  { %v901_v48 = vpack.c.bf16 %v215_v46, %v215_v46  ;;  %766 = vst.msk [vmem:[%s1601_s4 + $0x8] sm:$0xff] %vm764_vm1, %v1071_v47  ;;  %v605_v49 = vpop.f32.mrb[1].mxu1 }
  0xe2   :  { %504 = vst.msk [vmem:[%s1602_s3 + $0x4] sm:$0xf] %vm502_vm2, %v902_v45 }
  0xe3   :  { %765 = vst.msk [vmem:[%s1601_s4] sm:$0xff] %vm764_vm1, %v605_v49  ;;  %v1018_v50 = vpop.f32.mrb[2].mxu0 }
  0xe4   :  { %503 = vst.msk [vmem:[%s1602_s3] sm:$0xf] %vm502_vm2, %v901_v48  ;;  %v904_v51 = vpack.c.bf16 %v1018_v50, %v1018_v50  ;;  %v225_v52 = vpop.f32.mrb[3].mxu0  ;;  %v1074_v53 = vpop.f32.mrb[2].mxu1 }
  0xe5   :  { %v903_v54 = vpack.c.bf16 %v225_v52, %v225_v52  ;;  %768 = vst.msk [vmem:[%s1601_s4 + $0x18] sm:$0xff] %vm764_vm1, %v1074_v53  ;;  %v615_v55 = vpop.f32.mrb[3].mxu1 }
  0xe6   :  { %506 = vst.msk [vmem:[%s1602_s3 + $0xc] sm:$0xf] %vm502_vm2, %v904_v51 }
  0xe7   :  { %767 = vst.msk [vmem:[%s1601_s4 + $0x10] sm:$0xff] %vm764_vm1, %v615_v55  ;;  %v1021_v56 = vpop.f32.mrb[4].mxu0 }
  0xe8   :  { %505 = vst.msk [vmem:[%s1602_s3 + $0x8] sm:$0xf] %vm502_vm2, %v903_v54  ;;  %v906_v57 = vpack.c.bf16 %v1021_v56, %v1021_v56  ;;  %v235_v58 = vpop.f32.mrb[5].mxu0  ;;  %v1077_v59 = vpop.f32.mrb[4].mxu1 }
  0xe9   :  { %v905_v60 = vpack.c.bf16 %v235_v58, %v235_v58  ;;  %770 = vst.msk [vmem:[%s1601_s4 + $0x28] sm:$0xff] %vm764_vm1, %v1077_v59  ;;  %v625_v61 = vpop.f32.mrb[5].mxu1 }
  0xea   :  { %508 = vst.msk [vmem:[%s1602_s3 + $0x14] sm:$0xf] %vm502_vm2, %v906_v57 }
  0xeb   :  { %769 = vst.msk [vmem:[%s1601_s4 + $0x20] sm:$0xff] %vm764_vm1, %v625_v61  ;;  %v1024_v62 = vpop.f32.mrb[6].mxu0 }
  0xec   :  { %507 = vst.msk [vmem:[%s1602_s3 + $0x10] sm:$0xf] %vm502_vm2, %v905_v60  ;;  %v908_v63 = vpack.c.bf16 %v1024_v62, %v1024_v62  ;;  %v245_v0 = vpop.f32.mrb[7].mxu0  ;;  %v1080_v1 = vpop.f32.mrb[6].mxu1 }
  0xed   :  { %v907_v2 = vpack.c.bf16 %v245_v0, %v245_v0  ;;  %772 = vst.msk [vmem:[%s1601_s4 + $0x38] sm:$0xff] %vm764_vm1, %v1080_v1  ;;  %v635_v3 = vpop.f32.mrb[7].mxu1 }
  0xee   :  { %510 = vst.msk [vmem:[%s1602_s3 + $0x1c] sm:$0xf] %vm502_vm2, %v908_v63 }
  0xef   :  { %771 = vst.msk [vmem:[%s1601_s4 + $0x30] sm:$0xff] %vm764_vm1, %v635_v3  ;;  %v1027_v4 = vpop.f32.mrb[8].mxu0 }
  0xf0   :  { %509 = vst.msk [vmem:[%s1602_s3 + $0x18] sm:$0xf] %vm502_vm2, %v907_v2  ;;  %v910_v5 = vpack.c.bf16 %v1027_v4, %v1027_v4  ;;  %v255_v6 = vpop.f32.mrb[9].mxu0  ;;  %v1083_v7 = vpop.f32.mrb[8].mxu1 }
  0xf1   :  { %v909_v8 = vpack.c.bf16 %v255_v6, %v255_v6  ;;  %774 = vst.msk [vmem:[%s1601_s4 + $0x48] sm:$0xff] %vm764_vm1, %v1083_v7  ;;  %v645_v9 = vpop.f32.mrb[9].mxu1 }
  0xf2   :  { %512 = vst.msk [vmem:[%s1602_s3 + $0x24] sm:$0xf] %vm502_vm2, %v910_v5 }
  0xf3   :  { %773 = vst.msk [vmem:[%s1601_s4 + $0x40] sm:$0xff] %vm764_vm1, %v645_v9  ;;  %v1030_v10 = vpop.f32.mrb[10].mxu0 }
  0xf4   :  { %511 = vst.msk [vmem:[%s1602_s3 + $0x20] sm:$0xf] %vm502_vm2, %v909_v8  ;;  %v912_v11 = vpack.c.bf16 %v1030_v10, %v1030_v10  ;;  %v265_v12 = vpop.f32.mrb[11].mxu0  ;;  %v1086_v13 = vpop.f32.mrb[10].mxu1 }
  0xf5   :  { %v911_v14 = vpack.c.bf16 %v265_v12, %v265_v12  ;;  %776 = vst.msk [vmem:[%s1601_s4 + $0x58] sm:$0xff] %vm764_vm1, %v1086_v13  ;;  %v655_v15 = vpop.f32.mrb[11].mxu1 }
  0xf6   :  { %514 = vst.msk [vmem:[%s1602_s3 + $0x2c] sm:$0xf] %vm502_vm2, %v912_v11 }
  0xf7   :  { %775 = vst.msk [vmem:[%s1601_s4 + $0x50] sm:$0xff] %vm764_vm1, %v655_v15  ;;  %v1033_v16 = vpop.f32.mrb[12].mxu0 }
  0xf8   :  { %513 = vst.msk [vmem:[%s1602_s3 + $0x28] sm:$0xf] %vm502_vm2, %v911_v14  ;;  %v914_v17 = vpack.c.bf16 %v1033_v16, %v1033_v16  ;;  %v275_v18 = vpop.f32.mrb[13].mxu0  ;;  %v1089_v19 = vpop.f32.mrb[12].mxu1 }
  0xf9   :  { %v913_v20 = vpack.c.bf16 %v275_v18, %v275_v18  ;;  %778 = vst.msk [vmem:[%s1601_s4 + $0x68] sm:$0xff] %vm764_vm1, %v1089_v19  ;;  %v665_v21 = vpop.f32.mrb[13].mxu1 }
  0xfa   :  { %516 = vst.msk [vmem:[%s1602_s3 + $0x34] sm:$0xf] %vm502_vm2, %v914_v17 }
  0xfb   :  { %777 = vst.msk [vmem:[%s1601_s4 + $0x60] sm:$0xff] %vm764_vm1, %v665_v21  ;;  %v1036_v22 = vpop.f32.mrb[14].mxu0 }
  0xfc   :  { %515 = vst.msk [vmem:[%s1602_s3 + $0x30] sm:$0xf] %vm502_vm2, %v913_v20  ;;  %v916_v23 = vpack.c.bf16 %v1036_v22, %v1036_v22  ;;  %v285_v24 = vpop.f32.mrb[15].mxu0  ;;  %v1092_v25 = vpop.f32.mrb[14].mxu1 }
  0xfd   :  { %v915_v26 = vpack.c.bf16 %v285_v24, %v285_v24  ;;  %780 = vst.msk [vmem:[%s1601_s4 + $0x78] sm:$0xff] %vm764_vm1, %v1092_v25  ;;  %v675_v27 = vpop.f32.mrb[15].mxu1 }
  0xfe   :  { %518 = vst.msk [vmem:[%s1602_s3 + $0x3c] sm:$0xf] %vm502_vm2, %v916_v23 }
  0xff   :  { %779 = vst.msk [vmem:[%s1601_s4 + $0x70] sm:$0xff] %vm764_vm1, %v675_v27  ;;  %v1039_v28 = vpop.f32.mrb[16].mxu0 }
 0x100   :  { %517 = vst.msk [vmem:[%s1602_s3 + $0x38] sm:$0xf] %vm502_vm2, %v915_v26  ;;  %v918_v29 = vpack.c.bf16 %v1039_v28, %v1039_v28  ;;  %v295_v30 = vpop.f32.mrb[17].mxu0  ;;  %v1095_v31 = vpop.f32.mrb[16].mxu1 }
 0x101   :  { %v917_v32 = vpack.c.bf16 %v295_v30, %v295_v30  ;;  %782 = vst.msk [vmem:[%s1601_s4 + $0x88] sm:$0xff] %vm764_vm1, %v1095_v31  ;;  %v685_v33 = vpop.f32.mrb[17].mxu1 }
 0x102   :  { %520 = vst.msk [vmem:[%s1602_s3 + $0x44] sm:$0xf] %vm502_vm2, %v918_v29 }
 0x103   :  { %781 = vst.msk [vmem:[%s1601_s4 + $0x80] sm:$0xff] %vm764_vm1, %v685_v33  ;;  %v1042_v34 = vpop.f32.mrb[18].mxu0 }
 0x104   :  { %519 = vst.msk [vmem:[%s1602_s3 + $0x40] sm:$0xf] %vm502_vm2, %v917_v32  ;;  %v920_v35 = vpack.c.bf16 %v1042_v34, %v1042_v34  ;;  %v305_v36 = vpop.f32.mrb[19].mxu0  ;;  %v1098_v37 = vpop.f32.mrb[18].mxu1 }
 0x105   :  { %v919_v38 = vpack.c.bf16 %v305_v36, %v305_v36  ;;  %784 = vst.msk [vmem:[%s1601_s4 + $0x98] sm:$0xff] %vm764_vm1, %v1098_v37  ;;  %v695_v39 = vpop.f32.mrb[19].mxu1 }
 0x106   :  { %522 = vst.msk [vmem:[%s1602_s3 + $0x4c] sm:$0xf] %vm502_vm2, %v920_v35 }
 0x107   :  { %783 = vst.msk [vmem:[%s1601_s4 + $0x90] sm:$0xff] %vm764_vm1, %v695_v39  ;;  %v1045_v40 = vpop.f32.mrb[20].mxu0 }
 0x108   :  { %521 = vst.msk [vmem:[%s1602_s3 + $0x48] sm:$0xf] %vm502_vm2, %v919_v38  ;;  %v922_v41 = vpack.c.bf16 %v1045_v40, %v1045_v40  ;;  %v315_v42 = vpop.f32.mrb[21].mxu0  ;;  %v1101_v43 = vpop.f32.mrb[20].mxu1 }
 0x109   :  { %v921_v44 = vpack.c.bf16 %v315_v42, %v315_v42  ;;  %786 = vst.msk [vmem:[%s1601_s4 + $0xa8] sm:$0xff] %vm764_vm1, %v1101_v43  ;;  %v705_v45 = vpop.f32.mrb[21].mxu1 }
 0x10a   :  { %524 = vst.msk [vmem:[%s1602_s3 + $0x54] sm:$0xf] %vm502_vm2, %v922_v41 }
 0x10b   :  { %785 = vst.msk [vmem:[%s1601_s4 + $0xa0] sm:$0xff] %vm764_vm1, %v705_v45  ;;  %v1048_v46 = vpop.f32.mrb[22].mxu0 }
 0x10c   :  { %523 = vst.msk [vmem:[%s1602_s3 + $0x50] sm:$0xf] %vm502_vm2, %v921_v44  ;;  %v924_v47 = vpack.c.bf16 %v1048_v46, %v1048_v46  ;;  %v325_v48 = vpop.f32.mrb[23].mxu0  ;;  %v1104_v49 = vpop.f32.mrb[22].mxu1 }
 0x10d   :  { %v923_v50 = vpack.c.bf16 %v325_v48, %v325_v48  ;;  %788 = vst.msk [vmem:[%s1601_s4 + $0xb8] sm:$0xff] %vm764_vm1, %v1104_v49  ;;  %v715_v51 = vpop.f32.mrb[23].mxu1 }
 0x10e   :  { %526 = vst.msk [vmem:[%s1602_s3 + $0x5c] sm:$0xf] %vm502_vm2, %v924_v47 }
 0x10f   :  { %787 = vst.msk [vmem:[%s1601_s4 + $0xb0] sm:$0xff] %vm764_vm1, %v715_v51  ;;  %v1051_v52 = vpop.f32.mrb[24].mxu0 }
 0x110   :  { %525 = vst.msk [vmem:[%s1602_s3 + $0x58] sm:$0xf] %vm502_vm2, %v923_v50  ;;  %v926_v53 = vpack.c.bf16 %v1051_v52, %v1051_v52  ;;  %v335_v54 = vpop.f32.mrb[25].mxu0  ;;  %v1107_v55 = vpop.f32.mrb[24].mxu1 }
 0x111   :  { %v925_v56 = vpack.c.bf16 %v335_v54, %v335_v54  ;;  %790 = vst.msk [vmem:[%s1601_s4 + $0xc8] sm:$0xff] %vm764_vm1, %v1107_v55  ;;  %v725_v57 = vpop.f32.mrb[25].mxu1 }
 0x112   :  { %528 = vst.msk [vmem:[%s1602_s3 + $0x64] sm:$0xf] %vm502_vm2, %v926_v53 }
 0x113   :  { %789 = vst.msk [vmem:[%s1601_s4 + $0xc0] sm:$0xff] %vm764_vm1, %v725_v57  ;;  %v1054_v58 = vpop.f32.mrb[26].mxu0 }
 0x114   :  { %527 = vst.msk [vmem:[%s1602_s3 + $0x60] sm:$0xf] %vm502_vm2, %v925_v56  ;;  %v928_v59 = vpack.c.bf16 %v1054_v58, %v1054_v58  ;;  %v345_v60 = vpop.f32.mrb[27].mxu0  ;;  %v1110_v61 = vpop.f32.mrb[26].mxu1 }
 0x115   :  { %v927_v62 = vpack.c.bf16 %v345_v60, %v345_v60  ;;  %792 = vst.msk [vmem:[%s1601_s4 + $0xd8] sm:$0xff] %vm764_vm1, %v1110_v61  ;;  %v735_v63 = vpop.f32.mrb[27].mxu1 }
 0x116   :  { %530 = vst.msk [vmem:[%s1602_s3 + $0x6c] sm:$0xf] %vm502_vm2, %v928_v59 }
 0x117   :  { %791 = vst.msk [vmem:[%s1601_s4 + $0xd0] sm:$0xff] %vm764_vm1, %v735_v63  ;;  %v1057_v0 = vpop.f32.mrb[28].mxu0 }
 0x118   :  { %529 = vst.msk [vmem:[%s1602_s3 + $0x68] sm:$0xf] %vm502_vm2, %v927_v62  ;;  %v930_v1 = vpack.c.bf16 %v1057_v0, %v1057_v0  ;;  %v355_v2 = vpop.f32.mrb[29].mxu0  ;;  %v1113_v3 = vpop.f32.mrb[28].mxu1 }
 0x119   :  { %v929_v4 = vpack.c.bf16 %v355_v2, %v355_v2  ;;  %794 = vst.msk [vmem:[%s1601_s4 + $0xe8] sm:$0xff] %vm764_vm1, %v1113_v3  ;;  %v745_v5 = vpop.f32.mrb[29].mxu1 }
 0x11a   :  { %532 = vst.msk [vmem:[%s1602_s3 + $0x74] sm:$0xf] %vm502_vm2, %v930_v1 }
 0x11b   :  { %793 = vst.msk [vmem:[%s1601_s4 + $0xe0] sm:$0xff] %vm764_vm1, %v745_v5  ;;  %v1060_v6 = vpop.f32.mrb[30].mxu0 }
 0x11c   :  { %531 = vst.msk [vmem:[%s1602_s3 + $0x70] sm:$0xf] %vm502_vm2, %v929_v4  ;;  %v932_v7 = vpack.c.bf16 %v1060_v6, %v1060_v6  ;;  %v365_v8 = vpop.f32.mrb[31].mxu0  ;;  %v1116_v9 = vpop.f32.mrb[30].mxu1 }
 0x11d   :  { %v931_v10 = vpack.c.bf16 %v365_v8, %v365_v8  ;;  %796 = vst.msk [vmem:[%s1601_s4 + $0xf8] sm:$0xff] %vm764_vm1, %v1116_v9  ;;  %v755_v11 = vpop.f32.mrb[31].mxu1 }
 0x11e   :  { %534 = vst.msk [vmem:[%s1602_s3 + $0x7c] sm:$0xf] %vm502_vm2, %v932_v7 }
 0x11f   :  { %795 = vst.msk [vmem:[%s1601_s4 + $0xf0] sm:$0xff] %vm764_vm1, %v755_v11 }
 0x120   :  { %533 = vst.msk [vmem:[%s1602_s3 + $0x78] sm:$0xf] %vm502_vm2, %v931_v10 }

</bundles_post_ra>
